<compile_context>
chip_gen: v6e
topology: v6e:2x2x1
jax: 0.10.0
libtpu: 0.0.40
codegen_flags: <defaults>
</compile_context>

<pallas_src>
import functools

import jax
import jax.numpy as jnp
from jax.experimental import pallas as pl
from jax.experimental.pallas import tpu as pltpu

HIDDEN = 256
LN_EPS = 1e-5
LANES = 128


def _round_up(x, m):
    return ((x + m - 1) // m) * m


def _entity_classifier_kernel(x_ref, w1_ref, bpack_ref, w2_ref, b2_ref, o_ref):
    # x_ref:     (TM, input_dim)           (f32 or bf16)
    # w1_ref:    (input_dim, 256)          (f32 or bf16)
    # bpack_ref: (3, 256) f32  -> rows: [b1, gamma, beta]
    # w2_ref:    (256, L_pad)              (f32 or bf16)
    # b2_ref:    (1, L_pad) f32
    # o_ref:     (TM, L_pad)
    x = x_ref[...]

    # Linear 1 on the MXU, f32 accumulation regardless of input dtype.
    h = jnp.dot(x, w1_ref[...], preferred_element_type=jnp.float32)
    h = h + bpack_ref[0:1, :]                 # bias b1

    # ReLU (VPU)
    h = jnp.maximum(h, 0.0)

    # LayerNorm over the 256-wide hidden axis (f32 math).
    mean = jnp.mean(h, axis=-1, keepdims=True)
    centered = h - mean
    var = jnp.mean(centered * centered, axis=-1, keepdims=True)
    h = centered * jax.lax.rsqrt(var + LN_EPS)
    h = h * bpack_ref[1:2, :] + bpack_ref[2:3, :]   # gamma, beta

    # Linear 2 on the MXU, lane-dense (L_pad is a multiple of 128).
    out = jnp.dot(h.astype(w2_ref.dtype), w2_ref[...],
                  preferred_element_type=jnp.float32)
    out = out + b2_ref[...]
    o_ref[...] = out.astype(o_ref.dtype)


@functools.partial(jax.jit, static_argnames=("tm", "mxu_dtype"))
def entity_classifier_forward(x, params, tm=256, mxu_dtype=None):
    """x: (..., input_dim) float32.  Dropout rate is 0.0 -> identity.

    mxu_dtype: optionally cast x/w1/w2 (once, in the wrapper) to e.g.
    jnp.bfloat16 on v6e/v7x; accumulation and LayerNorm stay f32.
    """
    orig_shape = x.shape
    input_dim = orig_shape[-1]
    x2d = x.reshape(-1, input_dim)
    n_rows = x2d.shape[0]

    w1 = params["w1"]
    b1 = params["b1"].reshape(1, HIDDEN).astype(jnp.float32)
    gamma = params["gamma"].reshape(1, HIDDEN).astype(jnp.float32)
    beta = params["beta"].reshape(1, HIDDEN).astype(jnp.float32)
    w2 = params["w2"]
    b2 = params["b2"].reshape(1, -1).astype(jnp.float32)
    num_labels = w2.shape[1]

    # --- label-dim padding: lane-dense output / second matmul --------------
    l_pad = _round_up(num_labels, LANES)
    if l_pad != num_labels:
        w2 = jnp.pad(w2, ((0, 0), (0, l_pad - num_labels)))
        b2 = jnp.pad(b2, ((0, 0), (0, l_pad - num_labels)))

    # --- optional bf16 feed into the MXU (cast once, not per-tile) ---------
    if mxu_dtype is not None:
        x2d = x2d.astype(mxu_dtype)
        w1 = w1.astype(mxu_dtype)
        w2 = w2.astype(mxu_dtype)

    # --- row padding to the tile (no divisibility requirement on callers) --
    tm_eff = min(tm, _round_up(n_rows, 8))
    tm_eff = max(8, (tm_eff // 8) * 8)
    n_pad = _round_up(n_rows, tm_eff)
    if n_pad != n_rows:
        x2d = jnp.pad(x2d, ((0, n_pad - n_rows), (0, 0)))

    # Pack b1 / gamma / beta into one small resident block.
    bpack = jnp.concatenate([b1, gamma, beta], axis=0)          # (3, 256)

    grid = (n_pad // tm_eff,)
    elt = jnp.dtype(x2d.dtype).itemsize

    # Rough VMEM footprint (double-buffered tiles) with headroom.
    vmem_bytes = 2 * elt * (tm_eff * input_dim + input_dim * HIDDEN
                            + HIDDEN * l_pad)
    vmem_bytes += 2 * 4 * (tm_eff * l_pad + 3 * HIDDEN + l_pad)
    vmem_limit = min(64 << 20, max(32 << 20, int(1.5 * vmem_bytes)))

    cost = pl.CostEstimate(
        flops=2 * n_pad * input_dim * HIDDEN + 2 * n_pad * HIDDEN * l_pad,
        transcendentals=n_pad,
        bytes_accessed=(n_pad * input_dim * elt + input_dim * HIDDEN * elt
                        + HIDDEN * l_pad * elt + n_pad * l_pad * 4),
    )

    out2d = pl.pallas_call(
        _entity_classifier_kernel,
        out_shape=jax.ShapeDtypeStruct((n_pad, l_pad), jnp.float32),
        grid_spec=pltpu.PrefetchScalarGridSpec(
            num_scalar_prefetch=0,
            grid=grid,
            in_specs=[
                pl.BlockSpec((tm_eff, input_dim), lambda i: (i, 0)),   # x tile
                pl.BlockSpec((input_dim, HIDDEN), lambda i: (0, 0)),   # w1 (resident)
                pl.BlockSpec((3, HIDDEN), lambda i: (0, 0)),           # b1|gamma|beta
                pl.BlockSpec((HIDDEN, l_pad), lambda i: (0, 0)),       # w2 (resident)
                pl.BlockSpec((1, l_pad), lambda i: (0, 0)),            # b2
            ],
            out_specs=pl.BlockSpec((tm_eff, l_pad), lambda i: (i, 0)),
        ),
        compiler_params=pltpu.CompilerParams(
            dimension_semantics=("parallel",),
            vmem_limit_bytes=vmem_limit,
        ),
        cost_estimate=cost,
    )(x2d, w1, bpack, w2, b2)

    out = out2d[:n_rows, :num_labels]
    return out.reshape(orig_shape[:-1] + (num_labels,))
    # TODO(synk): for input_dim >~ 4096, add an innermost "arbitrary" K grid
    # axis with a (tm, 256) f32 VMEM accumulator to bound the x/w1 footprint.


def init_params(key, input_dim, num_entity_labels):
    """Deterministic synthetic init (uniform, PyTorch-Linear-style bounds)."""
    k1, k2, k3, k4 = jax.random.split(key, 4)
    bound1 = 1.0 / jnp.sqrt(input_dim)
    bound2 = 1.0 / jnp.sqrt(HIDDEN)
    return {
        "w1": jax.random.uniform(k1, (input_dim, HIDDEN), jnp.float32,
                                 -bound1, bound1),
        "b1": jax.random.uniform(k2, (1, HIDDEN), jnp.float32,
                                 -bound1, bound1),
        "gamma": jnp.ones((1, HIDDEN), jnp.float32),
        "beta": jnp.zeros((1, HIDDEN), jnp.float32),
        "w2": jax.random.uniform(k3, (HIDDEN, num_entity_labels), jnp.float32,
                                 -bound2, bound2),
        "b2": jax.random.uniform(k4, (1, num_entity_labels), jnp.float32,
                                 -bound2, bound2),
    }


def _reference_forward(x, params):
    """Plain-JAX reference mirroring the PyTorch forward (dropout p=0)."""
    h = x @ params["w1"] + params["b1"]
    h = jnp.maximum(h, 0.0)
    mean = jnp.mean(h, axis=-1, keepdims=True)
    var = jnp.mean((h - mean) ** 2, axis=-1, keepdims=True)
    h = (h - mean) / jnp.sqrt(var + LN_EPS)
    h = h * params["gamma"] + params["beta"]
    return h @ params["w2"] + params["b2"]


if __name__ == "__main__":
    key = jax.random.PRNGKey(0)

    # Case 1: tiny shapes from the module spec (exercises label padding).
    batch, seq, input_dim, num_labels = 2, 8, 32, 8
    kx, kp, kx2, kp2 = jax.random.split(key, 4)
    x = jax.random.normal(kx, (batch, seq, input_dim), jnp.float32)
    params = init_params(kp, input_dim, num_labels)

    out = jax.block_until_ready(entity_classifier_forward(x, params))
    ref = _reference_forward(x, params)
    assert out.shape == (batch, seq, num_labels)
    assert jnp.allclose(out, ref, atol=1e-4, rtol=1e-4), "case1 mismatch"

    # Case 2: non-tile-divisible rows + multi-tile grid (row padding path).
    batch2, seq2, input_dim2, num_labels2 = 4, 96, 64, 9
    x2 = jax.random.normal(kx2, (batch2, seq2, input_dim2), jnp.float32)
    params2 = init_params(kp2, input_dim2, num_labels2)

    out2 = jax.block_until_ready(
        entity_classifier_forward(x2, params2, tm=256))
    ref2 = _reference_forward(x2, params2)
    assert out2.shape == (batch2, seq2, num_labels2)
    assert jnp.allclose(out2, ref2, atol=1e-4, rtol=1e-4), "case2 mismatch"

    print("KERNEL_OK")
</pallas_src>

<mosaic_0001>
module attributes {stable_mosaic.version = 11 : i64} {
  func.func @_entity_classifier_kernel(%arg0: i32, %arg1: memref<16x32xf32, #tpu.memory_space<vmem>>, %arg2: memref<32x256xf32, #tpu.memory_space<vmem>>, %arg3: memref<3x256xf32, #tpu.memory_space<vmem>>, %arg4: memref<256x128xf32, #tpu.memory_space<vmem>>, %arg5: memref<1x128xf32, #tpu.memory_space<vmem>>, %arg6: memref<16x128xf32, #tpu.memory_space<vmem>>) attributes {dimension_semantics = [#tpu.dimension_semantics<parallel>], iteration_bounds = array<i64: 1>, scalar_prefetch = 0 : i64, scratch_operands = 0 : i64, tpu.core_type = #tpu.core_type<tc>, window_params = [{transform_indices = @transform_0, window_bounds = array<i64: 16, 32>}, {pipeline_mode = #tpu.pipeline_mode<synchronous>, transform_indices = @transform_1, window_bounds = array<i64: 32, 256>}, {pipeline_mode = #tpu.pipeline_mode<synchronous>, transform_indices = @transform_2, window_bounds = array<i64: 3, 256>}, {pipeline_mode = #tpu.pipeline_mode<synchronous>, transform_indices = @transform_3, window_bounds = array<i64: 256, 128>}, {pipeline_mode = #tpu.pipeline_mode<synchronous>, transform_indices = @transform_4, window_bounds = array<i64: 1, 128>}, {transform_indices = @transform_5, window_bounds = array<i64: 16, 128>}]} {
    %c0 = arith.constant 0 : index
    %c0_0 = arith.constant 0 : index
    %0 = vector.load %arg1[%c0, %c0_0] : memref<16x32xf32, #tpu.memory_space<vmem>>, vector<16x32xf32>
    %c0_1 = arith.constant 0 : index
    %c0_2 = arith.constant 0 : index
    %1 = vector.load %arg2[%c0_1, %c0_2] : memref<32x256xf32, #tpu.memory_space<vmem>>, vector<32x256xf32>
    %cst = arith.constant dense<0.000000e+00> : vector<16x256xf32>
    %2 = tpu.matmul %0, %1, %cst {dimension_numbers = #tpu.dot_dimension_numbers<[1], [0], [0], [1], [0, 0, 1, 1], [], []>} : vector<16x32xf32>, vector<32x256xf32>, vector<16x256xf32> -> vector<16x256xf32>
    %c0_3 = arith.constant 0 : index
    %c0_4 = arith.constant 0 : index
    %3 = vector.load %arg3[%c0_3, %c0_4] : memref<3x256xf32, #tpu.memory_space<vmem>>, vector<1x256xf32>
    %4 = vector.broadcast %3 : vector<1x256xf32> to vector<16x256xf32>
    %5 = arith.addf %2, %4 : vector<16x256xf32>
    %cst_5 = arith.constant 0.000000e+00 : f32
    %6 = vector.broadcast %cst_5 : f32 to vector<16x256xf32>
    %7 = arith.maximumf %5, %6 : vector<16x256xf32>
    %cst_6 = arith.constant dense<0.000000e+00> : vector<16xf32>
    %8 = vector.multi_reduction <add>, %7, %cst_6 [1] : vector<16x256xf32> to vector<16xf32>
    %9 = vector.shape_cast %8 : vector<16xf32> to vector<16x1xf32>
    %cst_7 = arith.constant 2.560000e+02 : f32
    %10 = vector.broadcast %cst_7 : f32 to vector<16x1xf32>
    %11 = arith.divf %9, %10 : vector<16x1xf32>
    %12 = vector.broadcast %11 : vector<16x1xf32> to vector<16x256xf32>
    %13 = arith.subf %7, %12 : vector<16x256xf32>
    %14 = arith.mulf %13, %13 : vector<16x256xf32>
    %cst_8 = arith.constant dense<0.000000e+00> : vector<16xf32>
    %15 = vector.multi_reduction <add>, %14, %cst_8 [1] : vector<16x256xf32> to vector<16xf32>
    %16 = vector.shape_cast %15 : vector<16xf32> to vector<16x1xf32>
    %cst_9 = arith.constant 2.560000e+02 : f32
    %17 = vector.broadcast %cst_9 : f32 to vector<16x1xf32>
    %18 = arith.divf %16, %17 : vector<16x1xf32>
    %cst_10 = arith.constant 9.99999974E-6 : f32
    %19 = vector.broadcast %cst_10 : f32 to vector<16x1xf32>
    %20 = arith.addf %18, %19 : vector<16x1xf32>
    %21 = math.rsqrt %20 : vector<16x1xf32>
    %22 = vector.broadcast %21 : vector<16x1xf32> to vector<16x256xf32>
    %23 = arith.mulf %13, %22 : vector<16x256xf32>
    %c1 = arith.constant 1 : index
    %c0_11 = arith.constant 0 : index
    %24 = vector.load %arg3[%c1, %c0_11] : memref<3x256xf32, #tpu.memory_space<vmem>>, vector<1x256xf32>
    %25 = vector.broadcast %24 : vector<1x256xf32> to vector<16x256xf32>
    %26 = arith.mulf %23, %25 : vector<16x256xf32>
    %c2 = arith.constant 2 : index
    %c0_12 = arith.constant 0 : index
    %27 = vector.load %arg3[%c2, %c0_12] : memref<3x256xf32, #tpu.memory_space<vmem>>, vector<1x256xf32>
    %28 = vector.broadcast %27 : vector<1x256xf32> to vector<16x256xf32>
    %29 = arith.addf %26, %28 : vector<16x256xf32>
    %c0_13 = arith.constant 0 : index
    %c0_14 = arith.constant 0 : index
    %30 = vector.load %arg4[%c0_13, %c0_14] : memref<256x128xf32, #tpu.memory_space<vmem>>, vector<256x128xf32>
    %cst_15 = arith.constant dense<0.000000e+00> : vector<16x128xf32>
    %31 = tpu.matmul %29, %30, %cst_15 {dimension_numbers = #tpu.dot_dimension_numbers<[1], [0], [0], [1], [0, 0, 1, 1], [], []>} : vector<16x256xf32>, vector<256x128xf32>, vector<16x128xf32> -> vector<16x128xf32>
    %c0_16 = arith.constant 0 : index
    %c0_17 = arith.constant 0 : index
    %32 = vector.load %arg5[%c0_16, %c0_17] : memref<1x128xf32, #tpu.memory_space<vmem>>, vector<1x128xf32>
    %33 = vector.broadcast %32 : vector<1x128xf32> to vector<16x128xf32>
    %34 = arith.addf %31, %33 : vector<16x128xf32>
    %c0_18 = arith.constant 0 : index
    %c0_19 = arith.constant 0 : index
    %35 = vector.load %arg6[%c0_18, %c0_19] : memref<16x128xf32, #tpu.memory_space<vmem>>, vector<16x128xf32>
    tpu.vector_store %arg6[%c0_18, %c0_19], %34 {strides = array<i32>} : memref<16x128xf32, #tpu.memory_space<vmem>>, vector<16x128xf32>,
    return
  }
  func.func @transform_0(%arg0: i32) -> (i32, i32) {
    %c0_i32 = arith.constant 0 : i32
    %c0_i32_0 = arith.constant 0 : i32
    return %arg0, %c0_i32 : i32, i32
  }
  func.func @transform_1(%arg0: i32) -> (i32, i32) {
    %c0_i32 = arith.constant 0 : i32
    %c0_i32_0 = arith.constant 0 : i32
    %c0_i32_1 = arith.constant 0 : i32
    return %c0_i32, %c0_i32_0 : i32, i32
  }
  func.func @transform_2(%arg0: i32) -> (i32, i32) {
    %c0_i32 = arith.constant 0 : i32
    %c0_i32_0 = arith.constant 0 : i32
    %c0_i32_1 = arith.constant 0 : i32
    return %c0_i32, %c0_i32_0 : i32, i32
  }
  func.func @transform_3(%arg0: i32) -> (i32, i32) {
    %c0_i32 = arith.constant 0 : i32
    %c0_i32_0 = arith.constant 0 : i32
    %c0_i32_1 = arith.constant 0 : i32
    return %c0_i32, %c0_i32_0 : i32, i32
  }
  func.func @transform_4(%arg0: i32) -> (i32, i32) {
    %c0_i32 = arith.constant 0 : i32
    %c0_i32_0 = arith.constant 0 : i32
    %c0_i32_1 = arith.constant 0 : i32
    return %c0_i32, %c0_i32_0 : i32, i32
  }
  func.func @transform_5(%arg0: i32) -> (i32, i32) {
    %c0_i32 = arith.constant 0 : i32
    %c0_i32_0 = arith.constant 0 : i32
    return %arg0, %c0_i32 : i32, i32
  }
}

</mosaic_0001>

<bundles_post_ra>
// kernel: entity_classifier_forward.1
= control target key start
LH: loop header
LB: loop body
LE: loop exit
PB: predicated region body
PF: predicated region fallthrough
CT: control target
= control target key end

     0   :  { %v365_v3 = vmov 0.0   ;;  %vm42_vm0 = vcmask 261120   ;;  %v32_v11 = vlaneseq  ;;  %s570_s1 = inlined_call_operand.vmem [shape: f32[32,256], index: 1, kind: input, shape index: {}]   ;;  %s571_s0 = inlined_call_operand.vmem [shape: f32[16,32], index: 0, kind: input, shape index: {}]   ;;  %s572_s2 = inlined_call_operand.vmem [shape: f32[3,256], index: 2, kind: input, shape index: {}]   ;;  %s573_s3 = inlined_call_operand.vmem [shape: f32[256,128], index: 3, kind: input, shape index: {}]   ;;  %s574_s4 = inlined_call_operand.vmem [shape: f32[1,128], index: 4, kind: input, shape index: {}]   ;;  %s575_s5 = inlined_call_operand.vmem [shape: f32[16,128], index: 5, kind: output, shape index: {}]  }
   0x1   :  { %v29_v0 = vld [vmem:[%s570_s1 + $0x38] sm:$0xff]  ;;  %v28_v1 = vld [vmem:[%s570_s1 + $0x30] sm:$0xff]  ;;  %v27_v2 = vld [vmem:[%s570_s1 + $0x28] sm:$0xff]  ;;  %113 = vmatprep.mubr.f32.mxu0 %v365_v3 }
   0x2   :  { %73 = vmatprep.subr.mxu0 %v29_v0  ;;  %v26_v4 = vld [vmem:[%s570_s1 + $0x20] sm:$0xff]  ;;  %v25_v5 = vld [vmem:[%s570_s1 + $0x18] sm:$0xff]  ;;  %v24_v6 = vld [vmem:[%s570_s1 + $0x10] sm:$0xff]  ;;  %v33_v12 = vshrl.u32 %v32_v11, 7 }
   0x3   :  { %74 = vmatpush1.msra.mxu0 %v28_v1  ;;  %v23_v7 = vld [vmem:[%s570_s1 + $0x8] sm:$0xff]  ;;  %v22_v8 = vld [vmem:[%s570_s1] sm:$0xff]  ;;  %v228_v32 = vld [vmem:[%s573_s3 + $0xf8] sm:$0xff] }
   0x4   :  { %75 = vmatprep.subr.mxu0 %v27_v2  ;;  %v20_v9 = vld [vmem:[%s571_s0] sm:$0xff]  ;;  %v21_v10 = vld [vmem:[%s571_s0 + $0x8] sm:$0xff]  ;;  %v426_v13 = vsub.s32 0, %v33_v12  ;;  %v431_v15 = vsub.s32 1, %v33_v12  ;;  %v212_v33 = vld [vmem:[%s573_s3 + $0x78] sm:$0xff]  ;;  %322 = vmatprep.subr.mxu1 %v228_v32 }
   0x5   :  { %76 = vmatpush1.msra.mxu0 %v26_v4  ;;  %v30_v14 = vld [vmem:[%s572_s2] ss:$4 sm:$0x3]  ;;  %v227_v34 = vld [vmem:[%s573_s3 + $0xf0] sm:$0xff]  ;;  %323 = vmatpush3.msra.mxu1 %v212_v33  ;;  %v226_v36 = vld [vmem:[%s573_s3 + $0xe8] sm:$0xff] }
   0x6   :  { %77 = vmatprep.subr.mxu0 %v25_v5  ;;  %v35_v16 = vrot.slane %v30_v14, %v426_v13  ;;  %v39_v17 = vrot.slane %v30_v14, %v431_v15  ;;  %v211_v35 = vld [vmem:[%s573_s3 + $0x70] sm:$0xff]  ;;  %324 = vmatprep.subr.mxu1 %v227_v34  ;;  %v210_v37 = vld [vmem:[%s573_s3 + $0x68] sm:$0xff]  ;;  %v225_v38 = vld [vmem:[%s573_s3 + $0xe0] sm:$0xff] }
   0x7   :  { %78 = vmatpush1.msra.mxu0 %v24_v6  ;;  %325 = vmatpush3.msra.mxu1 %v211_v35  ;;  %v209_v53 = vld [vmem:[%s573_s3 + $0x60] sm:$0xff]  ;;  %v224_v54 = vld [vmem:[%s573_s3 + $0xd8] sm:$0xff]  ;;  %v223_v56 = vld [vmem:[%s573_s3 + $0xd0] sm:$0xff] }
   0x8   :  { %79 = vmatprep.subr.mxu0 %v23_v7  ;;  %326 = vmatprep.subr.mxu1 %v226_v36  ;;  %v208_v55 = vld [vmem:[%s573_s3 + $0x58] sm:$0xff]  ;;  %v207_v57 = vld [vmem:[%s573_s3 + $0x50] sm:$0xff]  ;;  %v222_v58 = vld [vmem:[%s573_s3 + $0xc8] sm:$0xff] }
   0x9   :  { %80 = vmatpush1.msra.mxu0 %v22_v8  ;;  %327 = vmatpush3.msra.mxu1 %v210_v37  ;;  %v206_v59 = vld [vmem:[%s573_s3 + $0x48] sm:$0xff]  ;;  %v221_v60 = vld [vmem:[%s573_s3 + $0xc0] sm:$0xff]  ;;  %v220_v62 = vld [vmem:[%s573_s3 + $0xb8] sm:$0xff] }
   0xa   :  { %317 = vmatmul.mubr.msk.f32.vlgmr.msra.gmra.mxu0 %vm42_vm0, %v20_v9  ;;  %328 = vmatprep.subr.mxu1 %v225_v38  ;;  %v205_v61 = vld [vmem:[%s573_s3 + $0x40] sm:$0xff]  ;;  %v204_v63 = vld [vmem:[%s573_s3 + $0x38] sm:$0xff]  ;;  %v219_v0 = vld [vmem:[%s573_s3 + $0xb0] sm:$0xff] }
   0xb   :  { %119 = vmatprep.mubr.f32.mxu0 %v365_v3  ;;  %329 = vmatpush3.msra.mxu1 %v209_v53  ;;  %v203_v1 = vld [vmem:[%s573_s3 + $0x30] sm:$0xff]  ;;  %v218_v2 = vld [vmem:[%s573_s3 + $0xa8] sm:$0xff]  ;;  %v217_v4 = vld [vmem:[%s573_s3 + $0xa0] sm:$0xff] }
   0xc   :  { %330 = vmatprep.subr.mxu1 %v224_v54  ;;  %v202_v3 = vld [vmem:[%s573_s3 + $0x28] sm:$0xff]  ;;  %v201_v5 = vld [vmem:[%s573_s3 + $0x20] sm:$0xff]  ;;  %v216_v6 = vld [vmem:[%s573_s3 + $0x98] sm:$0xff] }
   0xd   :  { %331 = vmatpush3.msra.mxu1 %v208_v55  ;;  %v200_v7 = vld [vmem:[%s573_s3 + $0x18] sm:$0xff]  ;;  %v215_v8 = vld [vmem:[%s573_s3 + $0x90] sm:$0xff]  ;;  %v198_v11 = vld [vmem:[%s573_s3 + $0x8] sm:$0xff] }
   0xe   :  { %318 = vmatmul.mubr.msk.f32.gmra.mxu0 %vm42_vm0, %v21_v10  ;;  %332 = vmatprep.subr.mxu1 %v223_v56  ;;  %v199_v9 = vld [vmem:[%s573_s3 + $0x10] sm:$0xff]  ;;  %v214_v10 = vld [vmem:[%s573_s3 + $0x88] sm:$0xff]  ;;  %v213_v12 = vld [vmem:[%s573_s3 + $0x80] sm:$0xff] }
   0xf   :  { %333 = vmatpush3.msra.mxu1 %v207_v57  ;;  %v197_v14 = vld [vmem:[%s573_s3] sm:$0xff] }
  0x10   :  { %334 = vmatprep.subr.mxu1 %v222_v58 }
  0x11   :  { %335 = vmatpush3.msra.mxu1 %v206_v59 }
  0x12   :  { %336 = vmatprep.subr.mxu1 %v221_v60 }
  0x13   :  { %337 = vmatpush3.msra.mxu1 %v205_v61 }
  0x14   :  { %338 = vmatprep.subr.mxu1 %v220_v62 }
  0x15   :  { %339 = vmatpush3.msra.mxu1 %v204_v63 }
  0x16   :  { %340 = vmatprep.subr.mxu1 %v219_v0 }
  0x17   :  { %341 = vmatpush3.msra.mxu1 %v203_v1 }
  0x18   :  { %342 = vmatprep.subr.mxu1 %v218_v2 }
  0x19   :  { %343 = vmatpush3.msra.mxu1 %v202_v3 }
  0x1a   :  { %344 = vmatprep.subr.mxu1 %v217_v4 }
  0x1b   :  { %345 = vmatpush3.msra.mxu1 %v201_v5 }
  0x1c   :  { %346 = vmatprep.subr.mxu1 %v216_v6 }
  0x1d   :  { %347 = vmatpush3.msra.mxu1 %v200_v7 }
  0x1e   :  { %348 = vmatprep.subr.mxu1 %v215_v8 }
  0x1f   :  { %349 = vmatpush3.msra.mxu1 %v199_v9 }
  0x20   :  { %350 = vmatprep.subr.mxu1 %v214_v10 }
  0x21   :  { %351 = vmatpush3.msra.mxu1 %v198_v11 }
  0x22   :  { %352 = vmatprep.subr.mxu1 %v213_v12 }
  0x23   :  { %353 = vmatpush3.msra.mxu1 %v197_v14 }
  0xca   :  { %v115_v18 = vpop.f32.mrf.mxu0 }
  0xcb   :  { %v116_v19 = vadd.f32 %v115_v18, %v35_v16 }
  0xcc   :  { %v117_v20 = vpop.f32.mrf.mxu0 }
  0xcd   :  { %v118_v21 = vadd.f32 %v117_v20, %v39_v17  ;;  %v126_v23 = vmax.f32 %v116_v19, 0.0 }
  0xce   :  { %v121_v22 = vpop.f32.mrf.mxu0 }
  0xcf   :  { %v127_v24 = vmax.f32 %v118_v21, 0.0  ;;  %v122_v25 = vadd.f32 %v121_v22, %v35_v16  ;;  %v319_v22 = vld [vmem:[%s572_s2 + $0x1] ss:$4 sm:$0x3] }
  0xd0   :  { %v123_v26 = vpop.f32.mrf.mxu0 }
  0xd1   :  { %v124_v27 = vadd.f32 %v123_v26, %v39_v17  ;;  %v130_v28 = vadd.f32 %v127_v24, %v126_v23  ;;  %v128_v29 = vmax.f32 %v122_v25, 0.0  ;;  %v173_v25 = vrot.slane %v319_v22, %v431_v15 }
  0xd3   :  { %v129_v30 = vmax.f32 %v124_v27, 0.0  ;;  %131 = vadd.xlane.f32.xlu0 %v130_v28 }
  0xd5   :  { %v133_v31 = vadd.f32 %v129_v30, %v128_v29 }
  0xd7   :  { %134 = vadd.xlane.f32.xlu0 %v133_v31 }
 0x15c   :  { %v132_v39 = vpop.xlane.xlu0 %131 }
 0x15d   :  { %v137_v40 = vmul.f32 0.00390625, %v132_v39 }
 0x15f   :  { %v456_v41 = vsub.f32 %v126_v23, %v137_v40  ;;  %v458_v42 = vsub.f32 %v127_v24, %v137_v40  ;;  %v320_v23 = vld [vmem:[%s572_s2 + $0x2] ss:$4 sm:$0x3]  ;;  %v169_v24 = vrot.slane %v319_v22, %v426_v13 }
 0x160   :  { %v135_v43 = vpop.xlane.xlu0 %134  ;;  %v186_v28 = vrot.slane %v320_v23, %v426_v13 }
 0x161   :  { %v138_v44 = vmul.f32 0.00390625, %v135_v43  ;;  %v143_v45 = vmul.f32 %v456_v41, %v456_v41  ;;  %v144_v46 = vmul.f32 %v458_v42, %v458_v42 }
 0x163   :  { %v464_v47 = vsub.f32 %v128_v29, %v138_v44  ;;  %v466_v48 = vsub.f32 %v129_v30, %v138_v44  ;;  %v147_v49 = vadd.f32 %v144_v46, %v143_v45  ;;  %v190_v29 = vrot.slane %v320_v23, %v431_v15  ;;  %v321_v15 = vld [vmem:[%s574_s4] ss:$0 sm:$0xff] }
 0x165   :  { %148 = vadd.xlane.f32.xlu1 %v147_v49  ;;  %v145_v50 = vmul.f32 %v464_v47, %v464_v47  ;;  %v146_v51 = vmul.f32 %v466_v48, %v466_v48 }
 0x167   :  { %v150_v52 = vadd.f32 %v146_v51, %v145_v50 }
 0x169   :  { %151 = vadd.xlane.f32.xlu1 %v150_v52 }
 0x1ee   :  { %v149_v16 = vpop.xlane.xlu1 %148 }
 0x1ef   :  { %v153_v17 = vmul.f32 0.00390625, %v149_v16 }
 0x1f1   :  { %v155_v18 = vadd.f32 1e-05, %v153_v17 }
 0x1f2   :  { %v152_v19 = vpop.xlane.xlu1 %151 }
 0x1f3   :  { %361 = vrsqrt.f32 %v155_v18  ;;  %v154_v20 = vmul.f32 0.00390625, %v152_v19 }
 0x1f5   :  { %v156_v21 = vadd.f32 1e-05, %v154_v20 }
 0x1f7   :  { %363 = vrsqrt.f32 %v156_v21 }
 0x200   :  { %v362_v26 = vpop.eup %361 }
 0x201   :  { %v160_v27 = vmul.f32 %v362_v26, %v458_v42  ;;  %v159_v30 = vmul.f32 %v362_v26, %v456_v41 }
 0x203   :  { %v177_v31 = vmul.f32 %v173_v25, %v160_v27  ;;  %v176_v32 = vmul.f32 %v169_v24, %v159_v30 }
 0x204   :  { %v364_v33 = vpop.eup %363 }
 0x205   :  { %v194_v34 = vadd.f32 %v190_v29, %v177_v31  ;;  %v193_v35 = vadd.f32 %v186_v28, %v176_v32  ;;  %v162_v36 = vmul.f32 %v364_v33, %v466_v48  ;;  %v161_v37 = vmul.f32 %v364_v33, %v464_v47 }
 0x207   :  { %300 = vmatprep.mubr.f32.mxu1 %v194_v34  ;;  %v179_v38 = vmul.f32 %v173_v25, %v162_v36  ;;  %v178_v39 = vmul.f32 %v169_v24, %v161_v37 }
 0x208   :  { %301 = vmatmul.mubr.f32.vlgmr.msra.gmra.mxu1 %v193_v35 }
 0x209   :  { %v196_v40 = vadd.f32 %v190_v29, %v179_v38  ;;  %v195_v42 = vadd.f32 %v186_v28, %v178_v39 }
 0x20b   :  { %305 = vmatprep.mubr.f32.mxu1 %v196_v40 }
 0x20c   :  { %306 = vmatmul.mubr.f32.gmra.mxu1 %v195_v42 }
 0x2c8   :  { %v354_v13 = vpop.f32.mrf.mxu1 }
 0x2ca   :  { %v355_v41 = vpop.f32.mrf.mxu1 }
 0x2cb   :  { %v356_v43 = vadd.f32 %v355_v41, %v354_v13 }
 0x2cc   :  { %v357_v44 = vpop.f32.mrf.mxu1 }
 0x2cd   :  { %v303_v45 = vadd.f32 %v356_v43, %v321_v15 }
 0x2ce   :  { %v358_v46 = vpop.f32.mrf.mxu1 }
 0x2cf   :  { %311 = vst [vmem:[%s575_s5] sm:$0xff] %v303_v45  ;;  %v359_v47 = vadd.f32 %v358_v46, %v357_v44 }
 0x2d1   :  { %v308_v48 = vadd.f32 %v359_v47, %v321_v15 }
 0x2d3   :  { %312 = vst [vmem:[%s575_s5 + $0x8] sm:$0xff] %v308_v48 }

</bundles_post_ra>
